<compile_context>
chip_gen: v5e
topology: v5e:2x2
jax: 0.10.0
libtpu: 0.0.40
codegen_flags: <defaults>
</compile_context>

<pallas_src>
import jax
import jax.numpy as jnp
import numpy as np
from jax.experimental import pallas as pl
from jax.experimental.pallas import tpu as pltpu


def ehr_embed_kernel(x_ref, w_ref, pe_ref, o_ref):
    # x_ref : (Bb, T*F)        lane-dense input rows (source dtype)
    # w_ref : (T*F, (T+1)*D)   block-diagonal weight (compute dtype);
    #                          first D output columns are zero -> CLS slot
    # pe_ref: (1, (T+1)*D)     flattened PE row: pe[0] in the CLS slot,
    #                          pe[t]+bias in the real-token slots (f32)
    # o_ref : (Bb, (T+1)*D)    lane-dense output block
    x = x_ref[...]
    if x.dtype != w_ref.dtype:
        x = x.astype(w_ref.dtype)   # in-kernel cast keeps the x DMA at source dtype
    y = jnp.dot(x, w_ref[...], preferred_element_type=jnp.float32)
    o_ref[...] = (y + pe_ref[...]).astype(o_ref.dtype)   # single unmasked-dominant store


def make_positional_encoding(d_model, max_len):
    # Same formula as the PyTorch PositionalEncoding module.
    position = np.arange(0, max_len, dtype=np.float32)[:, None]            # (L, 1)
    div_term = np.exp(np.arange(0, d_model, 2, dtype=np.float32)
                      * (-(np.log(10000.0) / d_model)))                    # (D/2,)
    pe = np.zeros((max_len, d_model), dtype=np.float32)
    pe[:, 0::2] = np.sin(position * div_term)
    pe[:, 1::2] = np.cos(position * div_term)
    return jnp.asarray(pe)                                                 # (L, D)


def _round_up(x, m):
    return ((x + m - 1) // m) * m


def _pick_batch_block(batch, *, target=1024, min_block=256):
    """Choose (block_rows, padded_batch).

    block_rows is sublane-aligned (multiple of 8); batch is padded up to a
    multiple of it (the caller slices the padding off).  For very large
    batches keep >=4 grid steps (>=2 per v7x TensorCore) as long as each step
    still gets >= min_block rows; on 1-TC v5e/v6e the blocks stay large so the
    extra ~0.35us/step overhead is negligible.
    """
    if batch <= target:
        bb = max(8, _round_up(batch, 8))        # single grid step
        return bb, bb
    bb = target
    if pl.cdiv(batch, bb) < 4 and batch >= 4 * min_block:
        bb = _round_up(pl.cdiv(batch, 4), 8)
    return bb, _round_up(batch, bb)


def ehr_embedding(x, weight_fd, bias, pe, *,
                  compute_dtype=jnp.float32, out_dtype=jnp.float32):
    """x: (B, T, F) -> (B, T+1, D), matching EHREmbedding.forward (eval mode).

    weight_fd is the Linear weight transposed vs. PyTorch ((F, D)); pe may have
    max_len >= T+1 (extra rows are ignored).
    """
    B, T, F = x.shape
    D = weight_fd.shape[1]
    L = T + 1
    assert pe.shape[0] >= L and pe.shape[1] == D
    pe = pe[:L].astype(jnp.float32)

    TF, LD = T * F, L * D

    # Block-diagonal weight (T*F, (T+1)*D): token t's F inputs feed output
    # columns (t+1)*D:(t+2)*D; columns 0:D (the CLS slot) stay zero.  Tiny and
    # grid-invariant, so building/casting it in the wrapper is cheap.
    eye_t = jnp.eye(T, dtype=jnp.float32)
    w_blk = jnp.einsum('ab,fd->afbd', eye_t, weight_fd.astype(jnp.float32))
    w_big = jnp.concatenate(
        [jnp.zeros((TF, D), jnp.float32), w_blk.reshape(TF, T * D)], axis=1)
    w_big = w_big.astype(compute_dtype)

    # Flattened PE row: pe[0] for the CLS slot, pe[1:] + Linear bias for the
    # real tokens (CLS is zeros appended AFTER the Linear, so it gets no bias).
    pe_flat = jnp.concatenate(
        [pe[0:1, :], pe[1:, :] + bias.reshape(1, D).astype(jnp.float32)],
        axis=0).reshape(1, LD)

    # Lane-flat x (row-major reshape is free) + zero-pad the batch to a
    # multiple of the block; the padding is sliced off after the kernel.
    Bb, B_pad = _pick_batch_block(B)
    x_flat = x.reshape(B, TF)
    if B_pad != B:
        x_flat = jnp.pad(x_flat, ((0, B_pad - B), (0, 0)))

    grid = (B_pad // Bb,)
    cost = pl.CostEstimate(
        flops=2 * B_pad * TF * LD,
        transcendentals=0,
        bytes_accessed=(B_pad * TF * x_flat.dtype.itemsize
                        + B_pad * LD * jnp.dtype(out_dtype).itemsize
                        + TF * LD * jnp.dtype(compute_dtype).itemsize
                        + LD * 4))

    out_flat = pl.pallas_call(
        ehr_embed_kernel,
        out_shape=jax.ShapeDtypeStruct((B_pad, LD), out_dtype),
        grid=grid,
        in_specs=[
            pl.BlockSpec((Bb, TF), lambda b: (b, 0)),
            # Grid-invariant operands (constant index_map): DMA hoisted out of
            # the grid loop; they are tiny (TF*LD and LD elements).
            pl.BlockSpec((TF, LD), lambda b: (0, 0)),
            pl.BlockSpec((1, LD), lambda b: (0, 0)),
        ],
        out_specs=pl.BlockSpec((Bb, LD), lambda b: (b, 0)),
        compiler_params=pltpu.CompilerParams(
            dimension_semantics=("parallel",)),
        cost_estimate=cost,
    )(x_flat, w_big, pe_flat)

    # (B, (T+1)*D) -> (B, T+1, D): row-major reshape, effectively a bitcast.
    return out_flat[:B].reshape(B, L, D)


if __name__ == "__main__":
    # Shapes consistent with the module's forward:
    #   ehr_feature_size = 16, output_token_dim = 32, max_length = 8 (== seq)
    B, T, F, D = 2, 8, 16, 32
    max_length = T  # the PE broadcast in the PyTorch code requires max_len+1 == T+1

    key = jax.random.PRNGKey(0)
    kx, kw, kb = jax.random.split(key, 3)

    x = jax.random.normal(kx, (B, T, F), dtype=jnp.float32)

    # Deterministic Linear init (PyTorch default: U(-1/sqrt(F), 1/sqrt(F))).
    bound = 1.0 / np.sqrt(F)
    weight_fd = jax.random.uniform(kw, (F, D), jnp.float32, -bound, bound)
    bias = jax.random.uniform(kb, (D,), jnp.float32, -bound, bound)

    pe = make_positional_encoding(D, max_length + 1)  # (T+1, D)

    # Pure-JAX reference (mirrors the PyTorch forward; dropout in eval mode).
    ref = jnp.einsum("btf,fd->btd", x, weight_fd) + bias
    ref = jnp.concatenate([jnp.zeros((B, 1, D), jnp.float32), ref], axis=1)
    ref = ref + pe[None, :, :]

    # f32 compute path.
    out_f32 = jax.block_until_ready(ehr_embedding(x, weight_fd, bias, pe))
    np.testing.assert_allclose(np.asarray(out_f32), np.asarray(ref),
                               rtol=1e-5, atol=1e-5)

    # bf16 compute path (weight cast in wrapper; x cast inside the kernel so
    # its HBM DMA stays f32 — precision loss enters before the MXU, documented).
    out_bf16 = jax.block_until_ready(
        ehr_embedding(x, weight_fd, bias, pe, compute_dtype=jnp.bfloat16))
    np.testing.assert_allclose(np.asarray(out_bf16), np.asarray(ref),
                               rtol=2e-2, atol=2e-2)

    print("KERNEL_OK")
</pallas_src>

<mosaic_0001>
module attributes {stable_mosaic.version = 11 : i64} {
  func.func @ehr_embed_kernel(%arg0: i32, %arg1: memref<8x128xf32, #tpu.memory_space<vmem>>, %arg2: memref<128x288xf32, #tpu.memory_space<vmem>>, %arg3: memref<1x288xf32, #tpu.memory_space<vmem>>, %arg4: memref<8x288xf32, #tpu.memory_space<vmem>>) attributes {dimension_semantics = [#tpu.dimension_semantics<parallel>], iteration_bounds = array<i64: 1>, scalar_prefetch = 0 : i64, scratch_operands = 0 : i64, tpu.core_type = #tpu.core_type<tc>, window_params = [{transform_indices = @transform_0, window_bounds = array<i64: 8, 128>}, {pipeline_mode = #tpu.pipeline_mode<synchronous>, transform_indices = @transform_1, window_bounds = array<i64: 128, 288>}, {pipeline_mode = #tpu.pipeline_mode<synchronous>, transform_indices = @transform_2, window_bounds = array<i64: 1, 288>}, {transform_indices = @transform_3, window_bounds = array<i64: 8, 288>}]} {
    %c0 = arith.constant 0 : index
    %c0_0 = arith.constant 0 : index
    %0 = vector.load %arg1[%c0, %c0_0] : memref<8x128xf32, #tpu.memory_space<vmem>>, vector<8x128xf32>
    %c0_1 = arith.constant 0 : index
    %c0_2 = arith.constant 0 : index
    %1 = vector.load %arg2[%c0_1, %c0_2] : memref<128x288xf32, #tpu.memory_space<vmem>>, vector<128x288xf32>
    %cst = arith.constant dense<0.000000e+00> : vector<8x288xf32>
    %2 = tpu.matmul %0, %1, %cst {dimension_numbers = #tpu.dot_dimension_numbers<[1], [0], [0], [1], [0, 0, 1, 1], [], []>} : vector<8x128xf32>, vector<128x288xf32>, vector<8x288xf32> -> vector<8x288xf32>
    %c0_3 = arith.constant 0 : index
    %c0_4 = arith.constant 0 : index
    %3 = vector.load %arg3[%c0_3, %c0_4] : memref<1x288xf32, #tpu.memory_space<vmem>>, vector<1x288xf32>
    %4 = vector.broadcast %3 : vector<1x288xf32> to vector<8x288xf32>
    %5 = arith.addf %2, %4 : vector<8x288xf32>
    %c0_5 = arith.constant 0 : index
    %c0_6 = arith.constant 0 : index
    %6 = vector.load %arg4[%c0_5, %c0_6] : memref<8x288xf32, #tpu.memory_space<vmem>>, vector<8x288xf32>
    tpu.vector_store %arg4[%c0_5, %c0_6], %5 {strides = array<i32>} : memref<8x288xf32, #tpu.memory_space<vmem>>, vector<8x288xf32>,
    return
  }
  func.func @transform_0(%arg0: i32) -> (i32, i32) {
    %c0_i32 = arith.constant 0 : i32
    %c0_i32_0 = arith.constant 0 : i32
    return %arg0, %c0_i32 : i32, i32
  }
  func.func @transform_1(%arg0: i32) -> (i32, i32) {
    %c0_i32 = arith.constant 0 : i32
    %c0_i32_0 = arith.constant 0 : i32
    %c0_i32_1 = arith.constant 0 : i32
    return %c0_i32, %c0_i32_0 : i32, i32
  }
  func.func @transform_2(%arg0: i32) -> (i32, i32) {
    %c0_i32 = arith.constant 0 : i32
    %c0_i32_0 = arith.constant 0 : i32
    %c0_i32_1 = arith.constant 0 : i32
    return %c0_i32, %c0_i32_0 : i32, i32
  }
  func.func @transform_3(%arg0: i32) -> (i32, i32) {
    %c0_i32 = arith.constant 0 : i32
    %c0_i32_0 = arith.constant 0 : i32
    return %arg0, %c0_i32 : i32, i32
  }
}

</mosaic_0001>

<bundles_post_ra>
// kernel: tpu_custom_call.1
= control target key start
LH: loop header
LB: loop body
LE: loop exit
PB: predicated region body
PF: predicated region fallthrough
CT: control target
= control target key end

     0   :  { %s353_s0 = inlined_call_operand.vmem [shape: f32[8,128], index: 0, kind: input, shape index: {}]   ;;  %s354_s1 = inlined_call_operand.vmem [shape: f32[128,288], index: 1, kind: input, shape index: {}]   ;;  %s355_s2 = inlined_call_operand.vmem [shape: f32[1,288], index: 2, kind: input, shape index: {}]   ;;  %s356_s3 = inlined_call_operand.hbm [shape: f32[8,288], index: 3, kind: output, shape index: {}]  }
   0x1   :  { %v63_v0 = vld [vmem:[%s354_s1 + $0x178] sm:$0xff]  ;;  %v60_v1 = vld [vmem:[%s354_s1 + $0x160] sm:$0xff]  ;;  %v61_v2 = vld [vmem:[%s354_s1 + $0x168] sm:$0xff] }
   0x2   :  { %112 = vmatpush.msra.mxu2 %v63_v0  ;;  %v62_v3 = vld [vmem:[%s354_s1 + $0x170] sm:$0xff]  ;;  %v57_v4 = vld [vmem:[%s354_s1 + $0x148] sm:$0xff]  ;;  %72 = vmatpush.msra.mxu0 %v61_v2  ;;  %v59_v6 = vld [vmem:[%s354_s1 + $0x158] sm:$0xff] }
   0x3   :  { %92 = vmatpush.msra.mxu1 %v62_v3  ;;  %v58_v5 = vld [vmem:[%s354_s1 + $0x150] sm:$0xff]  ;;  %v55_v7 = vld [vmem:[%s354_s1 + $0x138] sm:$0xff]  ;;  %v56_v8 = vld [vmem:[%s354_s1 + $0x140] sm:$0xff] }
   0x4   :  { %113 = vmatpush.msra.mxu2 %v60_v1  ;;  %v54_v9 = vld [vmem:[%s354_s1 + $0x130] sm:$0xff]  ;;  %73 = vmatpush.msra.mxu0 %v58_v5  ;;  %v52_v10 = vld [vmem:[%s354_s1 + $0x120] sm:$0xff]  ;;  %v53_v11 = vld [vmem:[%s354_s1 + $0x128] sm:$0xff] }
   0x5   :  { %93 = vmatpush.msra.mxu1 %v59_v6  ;;  %v51_v12 = vld [vmem:[%s354_s1 + $0x118] sm:$0xff]  ;;  %v49_v13 = vld [vmem:[%s354_s1 + $0x108] sm:$0xff]  ;;  %v50_v14 = vld [vmem:[%s354_s1 + $0x110] sm:$0xff] }
   0x6   :  { %114 = vmatpush.msra.mxu2 %v57_v4  ;;  %74 = vmatpush.msra.mxu0 %v55_v7  ;;  %v48_v15 = vld [vmem:[%s354_s1 + $0x100] sm:$0xff]  ;;  %v46_v16 = vld [vmem:[%s354_s1 + $0xf0] sm:$0xff]  ;;  %v47_v17 = vld [vmem:[%s354_s1 + $0xf8] sm:$0xff] }
   0x7   :  { %94 = vmatpush.msra.mxu1 %v56_v8  ;;  %v45_v18 = vld [vmem:[%s354_s1 + $0xe8] sm:$0xff]  ;;  %v43_v19 = vld [vmem:[%s354_s1 + $0xd8] sm:$0xff]  ;;  %v44_v20 = vld [vmem:[%s354_s1 + $0xe0] sm:$0xff] }
   0x8   :  { %115 = vmatpush.msra.mxu2 %v54_v9  ;;  %75 = vmatpush.msra.mxu0 %v52_v10  ;;  %v42_v21 = vld [vmem:[%s354_s1 + $0xd0] sm:$0xff]  ;;  %v40_v22 = vld [vmem:[%s354_s1 + $0xc0] sm:$0xff]  ;;  %v41_v23 = vld [vmem:[%s354_s1 + $0xc8] sm:$0xff] }
   0x9   :  { %95 = vmatpush.msra.mxu1 %v53_v11  ;;  %v39_v24 = vld [vmem:[%s354_s1 + $0xb8] sm:$0xff]  ;;  %v37_v25 = vld [vmem:[%s354_s1 + $0xa8] sm:$0xff]  ;;  %v38_v26 = vld [vmem:[%s354_s1 + $0xb0] sm:$0xff] }
   0xa   :  { %116 = vmatpush.msra.mxu2 %v51_v12  ;;  %76 = vmatpush.msra.mxu0 %v49_v13  ;;  %v36_v27 = vld [vmem:[%s354_s1 + $0xa0] sm:$0xff] }
   0xb   :  { %96 = vmatpush.msra.mxu1 %v50_v14 }
   0xc   :  { %117 = vmatpush.msra.mxu2 %v48_v15  ;;  %77 = vmatpush.msra.mxu0 %v46_v16 }
   0xd   :  { %97 = vmatpush.msra.mxu1 %v47_v17 }
   0xe   :  { %118 = vmatpush.msra.mxu2 %v45_v18  ;;  %78 = vmatpush.msra.mxu0 %v43_v19 }
   0xf   :  { %98 = vmatpush.msra.mxu1 %v44_v20 }
  0x10   :  { %119 = vmatpush.msra.mxu2 %v42_v21  ;;  %79 = vmatpush.msra.mxu0 %v40_v22 }
  0x11   :  { %99 = vmatpush.msra.mxu1 %v41_v23 }
  0x12   :  { %8 = vsyncpa [#allocation3], 0  ;;  %120 = vmatpush.msra.mxu2 %v39_v24  ;;  %v34_v28 = vld [vmem:[%s354_s1 + $0x90] sm:$0xff]  ;;  %v35_v29 = vld [vmem:[%s354_s1 + $0x98] sm:$0xff]  ;;  %80 = vmatpush.msra.mxu0 %v37_v25  ;;  %s143_s6 = sshll.u32 %s356_s3, 4  ;;  %vm134_vm0 = vcmask 261120   ;;  %s144_s6 = int_to_ptr.hbm [resolvable:$true] %s143_s6 }
  0x13   :  { %v33_v30 = vld [vmem:[%s354_s1 + $0x88] sm:$0xff]  ;;  %100 = vmatpush.msra.mxu1 %v38_v26  ;;  %v31_v31 = vld [vmem:[%s354_s1 + $0x78] sm:$0xff]  ;;  %v32_v32 = vld [vmem:[%s354_s1 + $0x80] sm:$0xff] }
  0x14   :  { %121 = vmatpush.msra.mxu2 %v36_v27  ;;  %v30_v33 = vld [vmem:[%s354_s1 + $0x70] sm:$0xff]  ;;  %81 = vmatpush.msra.mxu0 %v34_v28  ;;  %v28_v34 = vld [vmem:[%s354_s1 + $0x60] sm:$0xff]  ;;  %v29_v35 = vld [vmem:[%s354_s1 + $0x68] sm:$0xff] }
  0x15   :  { %101 = vmatpush.msra.mxu1 %v35_v29  ;;  %v27_v36 = vld [vmem:[%s354_s1 + $0x58] sm:$0xff]  ;;  %v25_v37 = vld [vmem:[%s354_s1 + $0x48] sm:$0xff]  ;;  %v26_v38 = vld [vmem:[%s354_s1 + $0x50] sm:$0xff] }
  0x16   :  { %122 = vmatpush.msra.mxu2 %v33_v30  ;;  %82 = vmatpush.msra.mxu0 %v31_v31  ;;  %v24_v39 = vld [vmem:[%s354_s1 + $0x40] sm:$0xff]  ;;  %v22_v40 = vld [vmem:[%s354_s1 + $0x30] sm:$0xff]  ;;  %v23_v41 = vld [vmem:[%s354_s1 + $0x38] sm:$0xff] }
  0x17   :  { %102 = vmatpush.msra.mxu1 %v32_v32  ;;  %v21_v42 = vld [vmem:[%s354_s1 + $0x28] sm:$0xff]  ;;  %v19_v43 = vld [vmem:[%s354_s1 + $0x18] sm:$0xff]  ;;  %v20_v44 = vld [vmem:[%s354_s1 + $0x20] sm:$0xff] }
  0x18   :  { %123 = vmatpush.msra.mxu2 %v30_v33  ;;  %83 = vmatpush.msra.mxu0 %v28_v34  ;;  %v18_v45 = vld [vmem:[%s354_s1 + $0x10] sm:$0xff]  ;;  %v15_v46 = vld [vmem:[%s353_s0] sm:$0xff]  ;;  %v17_v48 = vld [vmem:[%s354_s1 + $0x8] sm:$0xff]  ;;  %s179_s0 = smov [#allocation2]  }
  0x19   :  { %103 = vmatpush.msra.mxu1 %v29_v35  ;;  %v16_v47 = vld [vmem:[%s354_s1] sm:$0xff]  ;;  %s141_s1 = sshll.u32 %s179_s0, 4  ;;  %s142_s1 = int_to_ptr.vmem [resolvable:$true] %s141_s1 }
  0x1a   :  { %124 = vmatpush.msra.mxu2 %v27_v36  ;;  %84 = vmatpush.msra.mxu0 %v25_v37  ;;  %v64_v49 = vld [vmem:[%s355_s2] sm:$0x7] }
  0x1b   :  { %104 = vmatpush.msra.mxu1 %v26_v38  ;;  %v66_v50 = vperm.slane %v64_v49, 0  ;;  %v67_v51 = vperm.slane %v64_v49, 1  ;;  %v68_v56 = vperm.slane %v64_v49, 2 }
  0x1c   :  { %125 = vmatpush.msra.mxu2 %v24_v39  ;;  %85 = vmatpush.msra.mxu0 %v22_v40 }
  0x1d   :  { %105 = vmatpush.msra.mxu1 %v23_v41 }
  0x1e   :  { %126 = vmatpush.msra.mxu2 %v21_v42  ;;  %86 = vmatpush.msra.mxu0 %v19_v43 }
  0x1f   :  { %106 = vmatpush.msra.mxu1 %v20_v44 }
  0x20   :  { %127 = vmatpush.msra.mxu2 %v18_v45  ;;  %87 = vmatpush.msra.mxu0 %v16_v47 }
  0x21   :  { %128 = vmatmul.f32.vlgmr.msra.gmra.mxu2 %v15_v46  ;;  %107 = vmatpush.msra.mxu1 %v17_v48 }
  0x22   :  { %88 = vmatmul.f32.vlgmr.msra.gmra.mxu0 %v15_v46  ;;  %108 = vmatmul.f32.vlgmr.msra.gmra.mxu1 %v15_v46 }
  0x9f   :  { %v89_v52 = vpop.f32.mrf.mxu0  ;;  %v109_v54 = vpop.f32.mrf.mxu1 }
  0xa0   :  { %v90_v53 = vadd.f32 %v89_v52, %v66_v50  ;;  %v110_v55 = vadd.f32 %v109_v54, %v67_v51 }
  0xa2   :  { %132 = vst [vmem:[#allocation2] sm:$0xff] %v90_v53 }
  0xa3   :  { %133 = vst [vmem:[#allocation2 + $0x8] sm:$0xff] %v110_v55 }
  0xa4   :  { %v129_v57 = vpop.f32.mrf.mxu2 }
  0xa5   :  { %v130_v58 = vadd.f32 %v129_v57, %v68_v56 }
  0xa7   :  { %135 = vst.msk [vmem:[#allocation2 + $0x10] sm:$0xff] %vm134_vm0, %v130_v58 }
  0xa8   :  { %146 = dma.vmem_to_hbm [thread:$0]  %s142_s1, 384, %s144_s6, [#allocation3]  }
  0xa9   :  { %177 = dma.done.wait [#allocation3], 384  }
  0xaa   :  { %178 = vsyncadd [#allocation3], 4294966912 }
  0xab   :  { %151 = vsyncpa [#allocation3], 1 }

</bundles_post_ra>
